<compile_context>
chip_gen: v5e
topology: v5e:2x2
jax: 0.10.0
libtpu: 0.0.40
codegen_flags: <defaults>
</compile_context>

<pallas_src>
import functools

import jax
import jax.numpy as jnp
from jax.experimental import pallas as pl
from jax.experimental.pallas import tpu as pltpu


def _round_up(x: int, m: int) -> int:
    return ((x + m - 1) // m) * m


def _discriminator_kernel(x_ref, w_ref, b_ref, o_ref):
    # x_ref: (tr, 128) -- R batch rows packed per 128-lane row (lane-dense)
    # w_ref: (128, R)  -- block-diagonal weights: column k holds the L weights
    #                     for packed slot k, zeros elsewhere (exact zeros, so
    #                     they contribute nothing regardless of MXU passes)
    # b_ref: (1,)      -- bias scalar in SMEM
    # o_ref: (tr, R)   -- out[r, k] = sigmoid(x_row[r*R + k] . w + b)
    x = x_ref[...].astype(jnp.float32)
    z = jnp.dot(x, w_ref[...], preferred_element_type=jnp.float32) + b_ref[0]
    # sigmoid via EUP exp + EUP approximate reciprocal (divide stays off VPU).
    o_ref[...] = pl.reciprocal(1.0 + jnp.exp(-z), approx=True).astype(o_ref.dtype)


@functools.partial(jax.jit, static_argnames=("block_batch",))
def discriminator_forward(x, weight, bias, *, block_batch=65536):
    """y = sigmoid(x @ weight + bias).

    x:      (B, L) f32 (bf16 also accepted; upcast happens in-kernel)
    weight: (L, 1) f32   (transpose of PyTorch nn.Linear's (1, L) weight)
    bias:   (1,)   f32
    returns (B, 1) f32  (matches the PyTorch module's output layout)
    """
    B, L = x.shape
    assert weight.shape == (L, 1) and bias.shape == (1,)
    # Packed-lane path needs L (padded to a power of two) to divide 128.
    assert 1 <= L <= 128
    # TODO(synk): add an unpacked path for input_length > 128 (not needed here).
    L_pad = max(1, pl.next_power_of_2(L))
    R = 128 // L_pad                       # batch rows packed per 128-lane row

    # Feature pad (no copy when L is already a power of two, e.g. L = 8).
    if L_pad != L:
        x = jnp.pad(x, ((0, 0), (0, L_pad - L)))

    # Pad batch only to a multiple of 8*R (= 128 rows for L_pad = 8) so the
    # packed view is sublane-aligned -- NOT up to the tile size (feedback #3).
    B_pad = _round_up(B, 8 * R)
    if B_pad != B:
        x = jnp.pad(x, ((0, B_pad - B), (0, 0)))

    rows = B_pad // R                      # multiple of 8 by construction
    x_rs = x.reshape(rows, R * L_pad)      # contiguous merge -> free bitcast

    # Block-diagonal weight matrix: wbd[k*L_pad + j, k] = w[j], zeros elsewhere.
    w_col = weight.reshape(L).astype(jnp.float32)
    if L_pad != L:
        w_col = jnp.pad(w_col, (0, L_pad - L))
    wbd = (jnp.eye(R, dtype=jnp.float32)[:, None, :]
           * w_col[None, :, None]).reshape(R * L_pad, R)

    # Rows per grid step.  block_batch batch rows -> block_batch // R packed
    # rows; keep it a multiple of 8 sublanes and clamp to the array.
    tr = min(max(8, (block_batch // R) // 8 * 8), rows)
    grid = (pl.cdiv(rows, tr),)            # ragged last tile: OOB writes masked

    out = pl.pallas_call(
        _discriminator_kernel,
        out_shape=jax.ShapeDtypeStruct((rows, R), jnp.float32),
        grid_spec=pltpu.PrefetchScalarGridSpec(
            num_scalar_prefetch=0,
            grid=grid,
            in_specs=[
                # Native-layout packed x: lane-dense, contiguous HBM DMA,
                # double-buffered across grid steps.
                pl.BlockSpec((tr, R * L_pad), lambda i: (i, 0)),
                # Tiny constant block-diagonal weight (block index never moves).
                pl.BlockSpec((R * L_pad, R), lambda i: (0, 0)),
                # Bias scalar lives in SMEM.
                pl.BlockSpec(memory_space=pltpu.MemorySpace.SMEM),
            ],
            out_specs=pl.BlockSpec((tr, R), lambda i: (i, 0)),
        ),
        compiler_params=pltpu.CompilerParams(
            # Independent batch tiles; lets the grid shard across v7x's 2 TCs.
            dimension_semantics=("parallel",),
        ),
        cost_estimate=pl.CostEstimate(
            flops=2 * rows * (R * L_pad) * R,
            transcendentals=2 * rows * R,
            bytes_accessed=4 * (rows * R * L_pad + R * L_pad * R + 1 + rows * R),
        ),
    )(x_rs, wbd, bias.astype(jnp.float32))

    # (rows, R) -> (B_pad,) is a contiguous merge (bitcast); drop the batch pad
    # and return the PyTorch (B, 1) layout.  All of this fuses inside the jit.
    return out.reshape(B_pad)[:B].reshape(B, 1)


def init_params(input_length: int, key):
    """Deterministic init matching nn.Linear(input_length, 1) shapes."""
    kw, kb = jax.random.split(key)
    bound = 1.0 / (input_length ** 0.5)
    # PyTorch weight is (1, L); we store its transpose (L, 1) for the kernel.
    weight = jax.random.uniform(kw, (input_length, 1), jnp.float32, -bound, bound)
    bias = jax.random.uniform(kb, (1,), jnp.float32, -bound, bound)
    return weight, bias


if __name__ == "__main__":
    key = jax.random.PRNGKey(0)
    kx, kp = jax.random.split(key)

    input_length = 8   # binary representation length of the "even numbers" GAN
    weight, bias = init_params(input_length, kp)

    # (batch, block_batch): default big tile (single step), a small tile that
    # exercises a 4-step pipelined grid, and a non-128-multiple batch that
    # exercises the (tiny) batch-pad + slice path.
    cases = [(512, 65536), (512, 128), (200, 65536)]
    for batch, bb in cases:
        kx, sub = jax.random.split(kx)
        x = jax.random.normal(sub, (batch, input_length), jnp.float32)

        out = jax.block_until_ready(
            discriminator_forward(x, weight, bias, block_batch=bb))

        # Reference in plain JAX (same math as the PyTorch forward).  Tolerance
        # covers the EUP approximate-reciprocal in the in-kernel sigmoid.
        ref = jax.nn.sigmoid(
            jnp.dot(x, weight, precision=jax.lax.Precision.HIGHEST) + bias)
        assert out.shape == (batch, 1), f"bad shape for case {(batch, bb)}"
        assert jnp.allclose(out, ref, atol=2e-3, rtol=2e-3), \
            f"mismatch vs reference for case {(batch, bb)}"

    print("KERNEL_OK")
</pallas_src>

<mosaic_0001>
module attributes {stable_mosaic.version = 11 : i64} {
  func.func @_discriminator_kernel(%arg0: i32, %arg1: memref<32x128xf32, #tpu.memory_space<vmem>>, %arg2: memref<128x16xf32, #tpu.memory_space<vmem>>, %arg3: memref<1xf32, #tpu.memory_space<smem>>, %arg4: memref<32x16xf32, #tpu.memory_space<vmem>>) attributes {dimension_semantics = [#tpu.dimension_semantics<parallel>], iteration_bounds = array<i64: 1>, scalar_prefetch = 0 : i64, scratch_operands = 0 : i64, tpu.core_type = #tpu.core_type<tc>, window_params = [{transform_indices = @transform_0, window_bounds = array<i64: 32, 128>}, {pipeline_mode = #tpu.pipeline_mode<synchronous>, transform_indices = @transform_1, window_bounds = array<i64: 128, 16>}, {transform_indices = @transform_2, window_bounds = array<i64: 1>}, {transform_indices = @transform_3, window_bounds = array<i64: 32, 16>}]} {
    %c0 = arith.constant 0 : index
    %c0_0 = arith.constant 0 : index
    %0 = vector.load %arg1[%c0, %c0_0] : memref<32x128xf32, #tpu.memory_space<vmem>>, vector<32x128xf32>
    %c0_1 = arith.constant 0 : index
    %c0_2 = arith.constant 0 : index
    %1 = vector.load %arg2[%c0_1, %c0_2] : memref<128x16xf32, #tpu.memory_space<vmem>>, vector<128x16xf32>
    %cst = arith.constant dense<0.000000e+00> : vector<32x16xf32>
    %2 = tpu.matmul %0, %1, %cst {dimension_numbers = #tpu.dot_dimension_numbers<[1], [0], [0], [1], [0, 0, 1, 1], [], []>} : vector<32x128xf32>, vector<128x16xf32>, vector<32x16xf32> -> vector<32x16xf32>
    %c0_3 = arith.constant 0 : index
    %3 = memref.load %arg3[%c0_3] : memref<1xf32, #tpu.memory_space<smem>>
    %4 = vector.broadcast %3 : f32 to vector<32x16xf32>
    %5 = arith.addf %2, %4 : vector<32x16xf32>
    %cst_4 = arith.constant 0.000000e+00 : f32
    %6 = vector.broadcast %cst_4 : f32 to vector<32x16xf32>
    %7 = arith.subf %6, %5 : vector<32x16xf32>
    %8 = math.exp %7 : vector<32x16xf32>
    %cst_5 = arith.constant 1.000000e+00 : f32
    %9 = vector.broadcast %cst_5 : f32 to vector<32x16xf32>
    %10 = arith.addf %9, %8 : vector<32x16xf32>
    %11 = tpu.reciprocal %10 {approx = true} : vector<32x16xf32> -> vector<32x16xf32>
    %c0_6 = arith.constant 0 : index
    %c0_7 = arith.constant 0 : index
    %12 = vector.load %arg4[%c0_6, %c0_7] : memref<32x16xf32, #tpu.memory_space<vmem>>, vector<32x16xf32>
    tpu.vector_store %arg4[%c0_6, %c0_7], %11 {strides = array<i32>} : memref<32x16xf32, #tpu.memory_space<vmem>>, vector<32x16xf32>,
    return
  }
  func.func @transform_0(%arg0: i32) -> (i32, i32) {
    %c0_i32 = arith.constant 0 : i32
    %c0_i32_0 = arith.constant 0 : i32
    return %arg0, %c0_i32 : i32, i32
  }
  func.func @transform_1(%arg0: i32) -> (i32, i32) {
    %c0_i32 = arith.constant 0 : i32
    %c0_i32_0 = arith.constant 0 : i32
    %c0_i32_1 = arith.constant 0 : i32
    return %c0_i32, %c0_i32_0 : i32, i32
  }
  func.func @transform_2(%arg0: i32) -> i32 {
    %c0_i32 = arith.constant 0 : i32
    %c0_i32_0 = arith.constant 0 : i32
    return %c0_i32 : i32
  }
  func.func @transform_3(%arg0: i32) -> (i32, i32) {
    %c0_i32 = arith.constant 0 : i32
    %c0_i32_0 = arith.constant 0 : i32
    return %arg0, %c0_i32 : i32, i32
  }
}

</mosaic_0001>

<bundles_post_ra>
// kernel: discriminator_forward.1
= control target key start
LH: loop header
LB: loop body
LE: loop exit
PB: predicated region body
PF: predicated region fallthrough
CT: control target
= control target key end

     0   :  { %vm86_vm0 = vcmask 130048   ;;  %s254_s1 = inlined_call_operand.vmem [shape: f32[128,16], index: 1, kind: input, shape index: {}]   ;;  %s255_s0 = inlined_call_operand.vmem [shape: f32[32,128], index: 0, kind: input, shape index: {}]   ;;  %s256_s2 = inlined_call_operand.<no memory space> [shape: f32[1], index: 2, kind: input, shape index: {}]   ;;  %s257_s3 = inlined_call_operand.vmem [shape: f32[32,16], index: 3, kind: output, shape index: {}]  }
   0x1   :  { %v34_v0 = vld [vmem:[%s254_s1 + $0x78] sm:$0xff]  ;;  %v33_v1 = vld [vmem:[%s254_s1 + $0x70] sm:$0xff]  ;;  %v32_v2 = vld [vmem:[%s254_s1 + $0x68] sm:$0xff]  ;;  %v36_v20 = vstv %s256_s2 }
   0x2   :  { %96 = vmatpush.msra.mxu2 %v34_v0  ;;  %97 = vmatpush.msra.mxu3 %v34_v0  ;;  %v31_v3 = vld [vmem:[%s254_s1 + $0x60] sm:$0xff]  ;;  %v30_v4 = vld [vmem:[%s254_s1 + $0x58] sm:$0xff]  ;;  %v29_v5 = vld [vmem:[%s254_s1 + $0x50] sm:$0xff] }
   0x3   :  { %37 = vmatpush.msra.mxu0 %v34_v0  ;;  %95 = vmatpush.msra.mxu1 %v34_v0  ;;  %v28_v6 = vld [vmem:[%s254_s1 + $0x48] sm:$0xff]  ;;  %v27_v7 = vld [vmem:[%s254_s1 + $0x40] sm:$0xff]  ;;  %v26_v8 = vld [vmem:[%s254_s1 + $0x38] sm:$0xff] }
   0x4   :  { %99 = vmatpush.msra.mxu2 %v33_v1  ;;  %100 = vmatpush.msra.mxu3 %v33_v1  ;;  %v25_v9 = vld [vmem:[%s254_s1 + $0x30] sm:$0xff]  ;;  %v24_v10 = vld [vmem:[%s254_s1 + $0x28] sm:$0xff]  ;;  %v23_v11 = vld [vmem:[%s254_s1 + $0x20] sm:$0xff] }
   0x5   :  { %38 = vmatpush.msra.mxu0 %v33_v1  ;;  %98 = vmatpush.msra.mxu1 %v33_v1  ;;  %v22_v12 = vld [vmem:[%s254_s1 + $0x18] sm:$0xff]  ;;  %v21_v13 = vld [vmem:[%s254_s1 + $0x10] sm:$0xff]  ;;  %v20_v14 = vld [vmem:[%s254_s1 + $0x8] sm:$0xff] }
   0x6   :  { %102 = vmatpush.msra.mxu2 %v32_v2  ;;  %103 = vmatpush.msra.mxu3 %v32_v2  ;;  %v19_v15 = vld [vmem:[%s254_s1] sm:$0xff]  ;;  %v17_v16 = vld [vmem:[%s255_s0 + $0x10] sm:$0xff]  ;;  %v18_v17 = vld [vmem:[%s255_s0 + $0x18] sm:$0xff] }
   0x7   :  { %39 = vmatpush.msra.mxu0 %v32_v2  ;;  %101 = vmatpush.msra.mxu1 %v32_v2  ;;  %v15_v18 = vld [vmem:[%s255_s0] sm:$0xff]  ;;  %v16_v19 = vld [vmem:[%s255_s0 + $0x8] sm:$0xff] }
   0x8   :  { %105 = vmatpush.msra.mxu2 %v31_v3  ;;  %106 = vmatpush.msra.mxu3 %v31_v3 }
   0x9   :  { %40 = vmatpush.msra.mxu0 %v31_v3  ;;  %104 = vmatpush.msra.mxu1 %v31_v3 }
   0xa   :  { %108 = vmatpush.msra.mxu2 %v30_v4  ;;  %109 = vmatpush.msra.mxu3 %v30_v4 }
   0xb   :  { %41 = vmatpush.msra.mxu0 %v30_v4  ;;  %107 = vmatpush.msra.mxu1 %v30_v4 }
   0xc   :  { %111 = vmatpush.msra.mxu2 %v29_v5  ;;  %112 = vmatpush.msra.mxu3 %v29_v5 }
   0xd   :  { %42 = vmatpush.msra.mxu0 %v29_v5  ;;  %110 = vmatpush.msra.mxu1 %v29_v5 }
   0xe   :  { %114 = vmatpush.msra.mxu2 %v28_v6  ;;  %115 = vmatpush.msra.mxu3 %v28_v6 }
   0xf   :  { %43 = vmatpush.msra.mxu0 %v28_v6  ;;  %113 = vmatpush.msra.mxu1 %v28_v6 }
  0x10   :  { %117 = vmatpush.msra.mxu2 %v27_v7  ;;  %118 = vmatpush.msra.mxu3 %v27_v7 }
  0x11   :  { %44 = vmatpush.msra.mxu0 %v27_v7  ;;  %116 = vmatpush.msra.mxu1 %v27_v7 }
  0x12   :  { %120 = vmatpush.msra.mxu2 %v26_v8  ;;  %121 = vmatpush.msra.mxu3 %v26_v8 }
  0x13   :  { %45 = vmatpush.msra.mxu0 %v26_v8  ;;  %119 = vmatpush.msra.mxu1 %v26_v8 }
  0x14   :  { %123 = vmatpush.msra.mxu2 %v25_v9  ;;  %124 = vmatpush.msra.mxu3 %v25_v9 }
  0x15   :  { %46 = vmatpush.msra.mxu0 %v25_v9  ;;  %122 = vmatpush.msra.mxu1 %v25_v9 }
  0x16   :  { %126 = vmatpush.msra.mxu2 %v24_v10  ;;  %127 = vmatpush.msra.mxu3 %v24_v10 }
  0x17   :  { %47 = vmatpush.msra.mxu0 %v24_v10  ;;  %125 = vmatpush.msra.mxu1 %v24_v10 }
  0x18   :  { %129 = vmatpush.msra.mxu2 %v23_v11  ;;  %130 = vmatpush.msra.mxu3 %v23_v11 }
  0x19   :  { %48 = vmatpush.msra.mxu0 %v23_v11  ;;  %128 = vmatpush.msra.mxu1 %v23_v11 }
  0x1a   :  { %132 = vmatpush.msra.mxu2 %v22_v12  ;;  %133 = vmatpush.msra.mxu3 %v22_v12 }
  0x1b   :  { %49 = vmatpush.msra.mxu0 %v22_v12  ;;  %131 = vmatpush.msra.mxu1 %v22_v12 }
  0x1c   :  { %135 = vmatpush.msra.mxu2 %v21_v13  ;;  %136 = vmatpush.msra.mxu3 %v21_v13 }
  0x1d   :  { %50 = vmatpush.msra.mxu0 %v21_v13  ;;  %134 = vmatpush.msra.mxu1 %v21_v13 }
  0x1e   :  { %138 = vmatpush.msra.mxu2 %v20_v14  ;;  %139 = vmatpush.msra.mxu3 %v20_v14 }
  0x1f   :  { %51 = vmatpush.msra.mxu0 %v20_v14  ;;  %137 = vmatpush.msra.mxu1 %v20_v14 }
  0x20   :  { %141 = vmatpush.msra.mxu2 %v19_v15  ;;  %142 = vmatpush.msra.mxu3 %v19_v15 }
  0x21   :  { %59 = vmatmul.f32.vlgmr.msra.gmra.mxu2 %v17_v16  ;;  %62 = vmatmul.f32.vlgmr.msra.gmra.mxu3 %v18_v17 }
  0x22   :  { %52 = vmatpush.msra.mxu0 %v19_v15  ;;  %140 = vmatpush.msra.mxu1 %v19_v15 }
  0x23   :  { %53 = vmatmul.f32.vlgmr.msra.gmra.mxu0 %v15_v18  ;;  %56 = vmatmul.f32.vlgmr.msra.gmra.mxu1 %v16_v19 }
  0xa0   :  { %v54_v21 = vpop.f32.mrf.mxu0  ;;  %v57_v22 = vpop.f32.mrf.mxu1 }
  0xa1   :  { %v55_v23 = vadd.f32 %v54_v21, %v36_v20  ;;  %v58_v24 = vadd.f32 %v57_v22, %v36_v20 }
  0xa3   :  { %v66_v25 = vsub.f32 0.0, %v55_v23  ;;  %v67_v26 = vsub.f32 0.0, %v58_v24 }
  0xa4   :  { %v60_v27 = vpop.f32.mrf.mxu2  ;;  %v63_v28 = vpop.f32.mrf.mxu3 }
  0xa5   :  { %v70_v29 = vmul.f32 1.442695, %v66_v25  ;;  %v72_v30 = vmul.f32 1.442695, %v67_v26  ;;  %v61_v31 = vadd.f32 %v60_v27, %v36_v20  ;;  %v64_v32 = vadd.f32 %v63_v28, %v36_v20 }
  0xa7   :  { %143 = vpow2.f32 %v70_v29  ;;  %v68_v33 = vsub.f32 0.0, %v61_v31  ;;  %v69_v34 = vsub.f32 0.0, %v64_v32 }
  0xa8   :  { %145 = vpow2.f32 %v72_v30 }
  0xa9   :  { %v74_v35 = vmul.f32 1.442695, %v68_v33  ;;  %v76_v36 = vmul.f32 1.442695, %v69_v34 }
  0xab   :  { %147 = vpow2.f32 %v74_v35 }
  0xac   :  { %149 = vpow2.f32 %v76_v36 }
  0xad   :  { %v144_v37 = vpop.eup %143 }
  0xae   :  { %v146_v38 = vpop.eup %145  ;;  %v78_v39 = vadd.f32 1.0, %v144_v37 }
  0xaf   :  { %v79_v40 = vadd.f32 1.0, %v146_v38 }
  0xb0   :  { %151 = vrcp.f32 %v78_v39 }
  0xb1   :  { %v148_v41 = vpop.eup %147  ;;  %153 = vrcp.f32 %v79_v40 }
  0xb2   :  { %v150_v42 = vpop.eup %149  ;;  %v80_v43 = vadd.f32 1.0, %v148_v41 }
  0xb3   :  { %v81_v44 = vadd.f32 1.0, %v150_v42 }
  0xb4   :  { %155 = vrcp.f32 %v80_v43 }
  0xb5   :  { %157 = vrcp.f32 %v81_v44 }
  0xb6   :  { %v152_v45 = vpop.eup %151 }
  0xb7   :  { %v154_v46 = vpop.eup %153  ;;  %87 = vst.msk [vmem:[%s257_s3] sm:$0xff] %vm86_vm0, %v152_v45 }
  0xb8   :  { %88 = vst.msk [vmem:[%s257_s3 + $0x8] sm:$0xff] %vm86_vm0, %v154_v46 }
  0xba   :  { %v156_v47 = vpop.eup %155 }
  0xbb   :  { %v158_v48 = vpop.eup %157  ;;  %89 = vst.msk [vmem:[%s257_s3 + $0x10] sm:$0xff] %vm86_vm0, %v156_v47 }
  0xbc   :  { %90 = vst.msk [vmem:[%s257_s3 + $0x18] sm:$0xff] %vm86_vm0, %v158_v48 }

</bundles_post_ra>
